<compile_context>
chip_gen: v7x
topology: tpu7x:2x2x1
jax: 0.10.0
libtpu: 0.0.40
codegen_flags: <defaults>
</compile_context>

<pallas_src>
import functools

import jax
import jax.numpy as jnp
from jax.experimental import pallas as pl
from jax.experimental.pallas import tpu as pltpu

# Chunk of timesteps resident in SMEM at a time.  SMEM cost: 2 buffers x
# 2 slots x CHUNK f32 (padded to (8,128) tiles) ~= 8 KiB, independent of T.
_CHUNK = 128


def _neuron_seq_kernel(x_hbm, thr_ref, pot_ref, spikes_hbm, new_pot_ref,
                       xbuf, obuf, in_sem, out_sem):
    """Spiking recurrence over a (num_chunks, chunk) input, streamed via DMA.

    Refs:
      x_hbm:       (NC, C) f32, HBM (pl.ANY)    input signal per timestep
      thr_ref:     (1,)    f32, SMEM            threshold
      pot_ref:     (1,)    f32, SMEM            incoming membrane potential
      spikes_hbm:  (NC, C) f32, HBM (pl.ANY)    output spike train
      new_pot_ref: (1,)    f32, SMEM            final membrane potential
      xbuf, obuf:  (2, C)  f32, SMEM scratch    double buffers (in / out)
      in_sem, out_sem: DMA semaphores, one per slot
    """
    num_chunks, chunk = x_hbm.shape
    thr = thr_ref[0]

    # Prime the pipeline: fetch chunk 0 into slot 0.
    pltpu.make_async_copy(x_hbm.at[0], xbuf.at[0], in_sem.at[0]).start()

    def process_chunk(c, pot):
        s = c & 1

        # Wait for chunk c's input DMA (slot s).
        pltpu.make_async_copy(x_hbm.at[0], xbuf.at[s], in_sem.at[s]).wait()

        # Prefetch chunk c+1 into the other slot; it overlaps this chunk's
        # scalar loop.
        @pl.when(c + 1 < num_chunks)
        def _():
            pltpu.make_async_copy(x_hbm.at[c + 1], xbuf.at[1 - s],
                                  in_sem.at[1 - s]).start()

        # Before reusing out-slot s, make sure the spike write-back issued two
        # chunks ago (same slot) has drained to HBM.
        @pl.when(c >= 2)
        def _():
            pltpu.make_async_copy(obuf.at[s], spikes_hbm.at[0],
                                  out_sem.at[s]).wait()

        # Scalar spiking recurrence over this chunk.  Fully unrolled so sld /
        # sst of neighbouring steps co-issue with this step's compare/select.
        def step(t, p):
            p = p + xbuf[s, t]
            spiked = p >= thr
            obuf[s, t] = spiked.astype(jnp.float32)     # spike = 0.0 / 1.0
            return jnp.where(spiked, 0.0, p)             # reset on spike

        pot = jax.lax.fori_loop(0, chunk, step, pot, unroll=True)

        # Kick off the async write-back of this chunk's spikes.
        pltpu.make_async_copy(obuf.at[s], spikes_hbm.at[c], out_sem.at[s]).start()
        return pot

    final_pot = jax.lax.fori_loop(0, num_chunks, process_chunk, pot_ref[0])
    new_pot_ref[0] = final_pot

    # Drain the last (up to two) outstanding spike write-backs before exiting.
    slot_last = (num_chunks - 1) & 1
    pltpu.make_async_copy(obuf.at[slot_last], spikes_hbm.at[0],
                          out_sem.at[slot_last]).wait()
    if num_chunks >= 2:
        slot_prev = (num_chunks - 2) & 1
        pltpu.make_async_copy(obuf.at[slot_prev], spikes_hbm.at[0],
                              out_sem.at[slot_prev]).wait()


@functools.partial(jax.jit, donate_argnums=(2,))
def _neuron_seq(x2d, threshold, potential):
    """One fused kernel call for num_chunks*chunk timesteps.

    Returns (spikes (NC, C), new_potential (1,)).  `potential` is donated so
    the in-place alias inside the kernel is real (no defensive copy).
    """
    num_chunks, chunk = x2d.shape
    smem = pl.BlockSpec(memory_space=pltpu.MemorySpace.SMEM)
    hbm = pl.BlockSpec(memory_space=pl.ANY)
    spikes2d, new_pot = pl.pallas_call(
        _neuron_seq_kernel,
        out_shape=(
            jax.ShapeDtypeStruct((num_chunks, chunk), jnp.float32),
            jax.ShapeDtypeStruct((1,), jnp.float32),
        ),
        in_specs=[hbm, smem, smem],
        out_specs=(hbm, smem),
        scratch_shapes=[
            pltpu.SMEM((2, chunk), jnp.float32),   # xbuf (double buffer)
            pltpu.SMEM((2, chunk), jnp.float32),   # obuf (double buffer)
            pltpu.SemaphoreType.DMA((2,)),         # in_sem
            pltpu.SemaphoreType.DMA((2,)),         # out_sem
        ],
        # potential input (arg 2) is updated in place into output 1.
        input_output_aliases={2: 1},
    )(x2d, threshold, potential)
    return spikes2d, new_pot


class Neuron:
    """JAX/Pallas mirror of the PyTorch Neuron module (stateful single neuron)."""

    def __init__(self, key):
        # torch.rand(1) * 1.0 -> uniform [0, 1), shape (1,)
        self.threshold = jax.random.uniform(key, (1,), dtype=jnp.float32)
        self.state = jnp.zeros((1,), dtype=jnp.float32)      # parity with torch
        self.potential = jnp.zeros((1,), dtype=jnp.float32)

    def forward(self, input_signal):
        """Single step, matching the torch module call-for-call.

        NOTE: this path is launch-overhead bound by construction; prefer
        forward_sequence() for any real rollout.
        """
        x = jnp.asarray(input_signal, jnp.float32).reshape(1, 1)
        spikes, self.potential = _neuron_seq(x, self.threshold, self.potential)
        return spikes.reshape(1)  # 0.0 or 1.0

    __call__ = forward

    def forward_sequence(self, inputs):
        """T steps fused into one kernel launch (equivalent to T forward() calls)."""
        xs = jnp.asarray(inputs, jnp.float32).reshape(-1)
        t = xs.shape[0]
        chunk = min(t, _CHUNK)
        # Zero-pad T to a multiple of the chunk size.  Padded steps add 0 to a
        # potential that is strictly below threshold (or exactly 0 after a
        # spike), so they never change the final potential; their spikes are
        # sliced off below.
        pad = (-t) % chunk
        if pad:
            xs = jnp.concatenate([xs, jnp.zeros((pad,), jnp.float32)])
        x2d = xs.reshape(-1, chunk)
        spikes2d, self.potential = _neuron_seq(x2d, self.threshold, self.potential)
        return spikes2d.reshape(-1)[:t]


if __name__ == "__main__":
    key = jax.random.PRNGKey(0)
    k_thr, k_x = jax.random.split(key)

    def reference(xs, thr, pot0):
        """Pure-JAX reference of the torch recurrence."""
        def step(p, x):
            p = p + x
            s = (p >= thr).astype(jnp.float32)
            return p * (1.0 - s), s
        pot, spikes = jax.lax.scan(step, pot0, xs)
        return spikes, pot

    # (a) short sequence (single chunk) through the fused kernel
    T1 = 8
    xs1 = jax.random.normal(k_x, (T1,), dtype=jnp.float32)
    n1 = Neuron(k_thr)
    s1 = jax.block_until_ready(n1.forward_sequence(xs1))
    ref_s1, ref_p1 = reference(xs1, n1.threshold[0], jnp.float32(0.0))
    assert jnp.allclose(s1, ref_s1), (s1, ref_s1)
    assert jnp.allclose(n1.potential[0], ref_p1), (n1.potential, ref_p1)

    # (b) longer sequence exercising the chunked, double-buffered DMA path
    #     (3 chunks of 128 incl. zero padding)
    T2 = 300
    xs2 = jax.random.normal(jax.random.fold_in(k_x, 1), (T2,), dtype=jnp.float32)
    n2 = Neuron(k_thr)
    s2 = jax.block_until_ready(n2.forward_sequence(xs2))
    ref_s2, ref_p2 = reference(xs2, n2.threshold[0], jnp.float32(0.0))
    assert jnp.allclose(s2, ref_s2), (s2, ref_s2)
    assert jnp.allclose(n2.potential[0], ref_p2), (n2.potential, ref_p2)

    # (c) per-call API parity with the torch module (each call = one step)
    n3 = Neuron(k_thr)
    s3 = jnp.concatenate([n3.forward(xs1[t:t + 1]) for t in range(T1)])
    s3 = jax.block_until_ready(s3)
    assert jnp.allclose(s3, ref_s1), (s3, ref_s1)
    assert jnp.allclose(n3.potential[0], ref_p1), (n3.potential, ref_p1)

    print("KERNEL_OK")
</pallas_src>

<mosaic_0001>
module attributes {stable_mosaic.version = 11 : i64} {
  func.func @_neuron_seq_kernel(%arg0: memref<1x8xf32, #tpu.memory_space<any>>, %arg1: memref<1xf32, #tpu.memory_space<smem>>, %arg2: memref<1xf32, #tpu.memory_space<smem>>, %arg3: memref<1x8xf32, #tpu.memory_space<any>>, %arg4: memref<1xf32, #tpu.memory_space<smem>>, %arg5: memref<2x8xf32, #tpu.memory_space<smem>>, %arg6: memref<2x8xf32, #tpu.memory_space<smem>>, %arg7: memref<2x!tpu.dma_semaphore, #tpu.memory_space<semaphore_mem>>, %arg8: memref<2x!tpu.dma_semaphore, #tpu.memory_space<semaphore_mem>>) attributes {dimension_semantics = [], scalar_prefetch = 0 : i64, scratch_operands = 4 : i64, tpu.core_type = #tpu.core_type<tc>} {
    %c0 = arith.constant 0 : index
    %0 = memref.load %arg1[%c0] : memref<1xf32, #tpu.memory_space<smem>>
    %c0_i32 = arith.constant 0 : i32
    %c0_i32_0 = arith.constant 0 : i32
    %c0_i32_1 = arith.constant 0 : i32
    %c0_i32_2 = arith.constant 0 : i32
    %1 = tpu.memref_slice %arg0[%c0_i32, %c0_i32_2] : memref<1x8xf32, #tpu.memory_space<any>> -> memref<1x8xf32, #tpu.memory_space<any>>
    %2 = tpu.memref_squeeze %1 : memref<1x8xf32, #tpu.memory_space<any>> -> memref<8xf32, #tpu.memory_space<any>>
    %c0_i32_3 = arith.constant 0 : i32
    %3 = tpu.memref_slice %arg5[%c0_i32_0, %c0_i32_3] : memref<2x8xf32, #tpu.memory_space<smem>> -> memref<1x8xf32, #tpu.memory_space<smem>>
    %4 = tpu.memref_squeeze %3 : memref<1x8xf32, #tpu.memory_space<smem>> -> memref<8xf32, #tpu.memory_space<smem>>
    %5 = tpu.memref_slice %arg7[%c0_i32_1] : memref<2x!tpu.dma_semaphore, #tpu.memory_space<semaphore_mem>> -> memref<1x!tpu.dma_semaphore, #tpu.memory_space<semaphore_mem>>
    %6 = tpu.memref_squeeze %5 : memref<1x!tpu.dma_semaphore, #tpu.memory_space<semaphore_mem>> -> memref<!tpu.dma_semaphore, #tpu.memory_space<semaphore_mem>>
    tpu.enqueue_dma source(%2 : memref<8xf32, #tpu.memory_space<any>>) target(%4 : memref<8xf32, #tpu.memory_space<smem>>) target_semaphore(%6 : memref<!tpu.dma_semaphore, #tpu.memory_space<semaphore_mem>>)
    %c0_4 = arith.constant 0 : index
    %7 = memref.load %arg2[%c0_4] : memref<1xf32, #tpu.memory_space<smem>>
    %c0_i32_5 = arith.constant 0 : i32
    %c1_i32 = arith.constant 1 : i32
    %8 = arith.andi %c0_i32_5, %c1_i32 : i32
    %c0_i32_6 = arith.constant 0 : i32
    %c0_i32_7 = arith.constant 0 : i32
    %9 = tpu.memref_slice %arg0[%c0_i32_6, %c0_i32_7] : memref<1x8xf32, #tpu.memory_space<any>> -> memref<1x8xf32, #tpu.memory_space<any>>
    %10 = tpu.memref_squeeze %9 : memref<1x8xf32, #tpu.memory_space<any>> -> memref<8xf32, #tpu.memory_space<any>>
    %c0_i32_8 = arith.constant 0 : i32
    %11 = tpu.memref_slice %arg5[%8, %c0_i32_8] : memref<2x8xf32, #tpu.memory_space<smem>> -> memref<1x8xf32, #tpu.memory_space<smem>>
    %12 = tpu.memref_squeeze %11 : memref<1x8xf32, #tpu.memory_space<smem>> -> memref<8xf32, #tpu.memory_space<smem>>
    %13 = tpu.memref_slice %arg7[%8] : memref<2x!tpu.dma_semaphore, #tpu.memory_space<semaphore_mem>> -> memref<1x!tpu.dma_semaphore, #tpu.memory_space<semaphore_mem>>
    %14 = tpu.memref_squeeze %13 : memref<1x!tpu.dma_semaphore, #tpu.memory_space<semaphore_mem>> -> memref<!tpu.dma_semaphore, #tpu.memory_space<semaphore_mem>>
    tpu.wait_dma2 semaphore(%14 : memref<!tpu.dma_semaphore, #tpu.memory_space<semaphore_mem>>) src(%10 : memref<8xf32, #tpu.memory_space<any>>) dst(%12 : memref<8xf32, #tpu.memory_space<smem>>)
    %c1_i32_9 = arith.constant 1 : i32
    %15 = arith.addi %c0_i32_5, %c1_i32_9 : i32
    %c1_i32_10 = arith.constant 1 : i32
    %16 = arith.cmpi slt, %15, %c1_i32_10 : i32
    %17 = arith.extui %16 : i1 to i32
    %c0_i32_11 = arith.constant 0 : i32
    %18 = arith.cmpi ne, %17, %c0_i32_11 : i32
    scf.if %18 {
      %c1_i32_32 = arith.constant 1 : i32
      %123 = arith.addi %c0_i32_5, %c1_i32_32 : i32
      %c1_i32_33 = arith.constant 1 : i32
      %124 = arith.subi %c1_i32_33, %8 : i32
      %c1_i32_34 = arith.constant 1 : i32
      %125 = arith.subi %c1_i32_34, %8 : i32
      %c0_i32_35 = arith.constant 0 : i32
      %126 = tpu.memref_slice %arg0[%123, %c0_i32_35] : memref<1x8xf32, #tpu.memory_space<any>> -> memref<1x8xf32, #tpu.memory_space<any>>
      %127 = tpu.memref_squeeze %126 : memref<1x8xf32, #tpu.memory_space<any>> -> memref<8xf32, #tpu.memory_space<any>>
      %c0_i32_36 = arith.constant 0 : i32
      %128 = tpu.memref_slice %arg5[%124, %c0_i32_36] : memref<2x8xf32, #tpu.memory_space<smem>> -> memref<1x8xf32, #tpu.memory_space<smem>>
      %129 = tpu.memref_squeeze %128 : memref<1x8xf32, #tpu.memory_space<smem>> -> memref<8xf32, #tpu.memory_space<smem>>
      %130 = tpu.memref_slice %arg7[%125] : memref<2x!tpu.dma_semaphore, #tpu.memory_space<semaphore_mem>> -> memref<1x!tpu.dma_semaphore, #tpu.memory_space<semaphore_mem>>
      %131 = tpu.memref_squeeze %130 : memref<1x!tpu.dma_semaphore, #tpu.memory_space<semaphore_mem>> -> memref<!tpu.dma_semaphore, #tpu.memory_space<semaphore_mem>>
      tpu.enqueue_dma source(%127 : memref<8xf32, #tpu.memory_space<any>>) target(%129 : memref<8xf32, #tpu.memory_space<smem>>) target_semaphore(%131 : memref<!tpu.dma_semaphore, #tpu.memory_space<semaphore_mem>>)
    } else {
    }
    %c2_i32 = arith.constant 2 : i32
    %19 = arith.cmpi sge, %c0_i32_5, %c2_i32 : i32
    %20 = arith.extui %19 : i1 to i32
    %c0_i32_12 = arith.constant 0 : i32
    %21 = arith.cmpi ne, %20, %c0_i32_12 : i32
    scf.if %21 {
      %c0_i32_32 = arith.constant 0 : i32
      %c0_i32_33 = arith.constant 0 : i32
      %123 = tpu.memref_slice %arg6[%8, %c0_i32_33] : memref<2x8xf32, #tpu.memory_space<smem>> -> memref<1x8xf32, #tpu.memory_space<smem>>
      %124 = tpu.memref_squeeze %123 : memref<1x8xf32, #tpu.memory_space<smem>> -> memref<8xf32, #tpu.memory_space<smem>>
      %c0_i32_34 = arith.constant 0 : i32
      %125 = tpu.memref_slice %arg3[%c0_i32_32, %c0_i32_34] : memref<1x8xf32, #tpu.memory_space<any>> -> memref<1x8xf32, #tpu.memory_space<any>>
      %126 = tpu.memref_squeeze %125 : memref<1x8xf32, #tpu.memory_space<any>> -> memref<8xf32, #tpu.memory_space<any>>
      %127 = tpu.memref_slice %arg8[%8] : memref<2x!tpu.dma_semaphore, #tpu.memory_space<semaphore_mem>> -> memref<1x!tpu.dma_semaphore, #tpu.memory_space<semaphore_mem>>
      %128 = tpu.memref_squeeze %127 : memref<1x!tpu.dma_semaphore, #tpu.memory_space<semaphore_mem>> -> memref<!tpu.dma_semaphore, #tpu.memory_space<semaphore_mem>>
      tpu.wait_dma2 semaphore(%128 : memref<!tpu.dma_semaphore, #tpu.memory_space<semaphore_mem>>) src(%124 : memref<8xf32, #tpu.memory_space<smem>>) dst(%126 : memref<8xf32, #tpu.memory_space<any>>)
    } else {
    }
    %c0_i32_13 = arith.constant 0 : i32
    %22 = arith.index_cast %8 : i32 to index
    %23 = arith.index_cast %c0_i32_13 : i32 to index
    %24 = memref.load %arg5[%22, %23] : memref<2x8xf32, #tpu.memory_space<smem>>
    %25 = arith.addf %7, %24 : f32
    %26 = arith.cmpf oge, %25, %0 : f32
    %27 = arith.extui %26 : i1 to i32
    %28 = arith.sitofp %27 : i32 to f32
    %29 = arith.index_cast %8 : i32 to index
    %30 = arith.index_cast %c0_i32_13 : i32 to index
    %31 = memref.load %arg6[%29, %30] : memref<2x8xf32, #tpu.memory_space<smem>>
    memref.store %28, %arg6[%29, %30] : memref<2x8xf32, #tpu.memory_space<smem>>
    %cst = arith.constant 0.000000e+00 : f32
    %32 = arith.select %26, %cst, %25 : f32
    %c1_i32_14 = arith.constant 1 : i32
    %33 = arith.index_cast %8 : i32 to index
    %34 = arith.index_cast %c1_i32_14 : i32 to index
    %35 = memref.load %arg5[%33, %34] : memref<2x8xf32, #tpu.memory_space<smem>>
    %36 = arith.addf %32, %35 : f32
    %37 = arith.cmpf oge, %36, %0 : f32
    %38 = arith.extui %37 : i1 to i32
    %39 = arith.sitofp %38 : i32 to f32
    %40 = arith.index_cast %8 : i32 to index
    %41 = arith.index_cast %c1_i32_14 : i32 to index
    %42 = memref.load %arg6[%40, %41] : memref<2x8xf32, #tpu.memory_space<smem>>
    memref.store %39, %arg6[%40, %41] : memref<2x8xf32, #tpu.memory_space<smem>>
    %cst_15 = arith.constant 0.000000e+00 : f32
    %43 = arith.select %37, %cst_15, %36 : f32
    %c2_i32_16 = arith.constant 2 : i32
    %44 = arith.index_cast %8 : i32 to index
    %45 = arith.index_cast %c2_i32_16 : i32 to index
    %46 = memref.load %arg5[%44, %45] : memref<2x8xf32, #tpu.memory_space<smem>>
    %47 = arith.addf %43, %46 : f32
    %48 = arith.cmpf oge, %47, %0 : f32
    %49 = arith.extui %48 : i1 to i32
    %50 = arith.sitofp %49 : i32 to f32
    %51 = arith.index_cast %8 : i32 to index
    %52 = arith.index_cast %c2_i32_16 : i32 to index
    %53 = memref.load %arg6[%51, %52] : memref<2x8xf32, #tpu.memory_space<smem>>
    memref.store %50, %arg6[%51, %52] : memref<2x8xf32, #tpu.memory_space<smem>>
    %cst_17 = arith.constant 0.000000e+00 : f32
    %54 = arith.select %48, %cst_17, %47 : f32
    %c3_i32 = arith.constant 3 : i32
    %55 = arith.index_cast %8 : i32 to index
    %56 = arith.index_cast %c3_i32 : i32 to index
    %57 = memref.load %arg5[%55, %56] : memref<2x8xf32, #tpu.memory_space<smem>>
    %58 = arith.addf %54, %57 : f32
    %59 = arith.cmpf oge, %58, %0 : f32
    %60 = arith.extui %59 : i1 to i32
    %61 = arith.sitofp %60 : i32 to f32
    %62 = arith.index_cast %8 : i32 to index
    %63 = arith.index_cast %c3_i32 : i32 to index
    %64 = memref.load %arg6[%62, %63] : memref<2x8xf32, #tpu.memory_space<smem>>
    memref.store %61, %arg6[%62, %63] : memref<2x8xf32, #tpu.memory_space<smem>>
    %cst_18 = arith.constant 0.000000e+00 : f32
    %65 = arith.select %59, %cst_18, %58 : f32
    %c4_i32 = arith.constant 4 : i32
    %66 = arith.index_cast %8 : i32 to index
    %67 = arith.index_cast %c4_i32 : i32 to index
    %68 = memref.load %arg5[%66, %67] : memref<2x8xf32, #tpu.memory_space<smem>>
    %69 = arith.addf %65, %68 : f32
    %70 = arith.cmpf oge, %69, %0 : f32
    %71 = arith.extui %70 : i1 to i32
    %72 = arith.sitofp %71 : i32 to f32
    %73 = arith.index_cast %8 : i32 to index
    %74 = arith.index_cast %c4_i32 : i32 to index
    %75 = memref.load %arg6[%73, %74] : memref<2x8xf32, #tpu.memory_space<smem>>
    memref.store %72, %arg6[%73, %74] : memref<2x8xf32, #tpu.memory_space<smem>>
    %cst_19 = arith.constant 0.000000e+00 : f32
    %76 = arith.select %70, %cst_19, %69 : f32
    %c5_i32 = arith.constant 5 : i32
    %77 = arith.index_cast %8 : i32 to index
    %78 = arith.index_cast %c5_i32 : i32 to index
    %79 = memref.load %arg5[%77, %78] : memref<2x8xf32, #tpu.memory_space<smem>>
    %80 = arith.addf %76, %79 : f32
    %81 = arith.cmpf oge, %80, %0 : f32
    %82 = arith.extui %81 : i1 to i32
    %83 = arith.sitofp %82 : i32 to f32
    %84 = arith.index_cast %8 : i32 to index
    %85 = arith.index_cast %c5_i32 : i32 to index
    %86 = memref.load %arg6[%84, %85] : memref<2x8xf32, #tpu.memory_space<smem>>
    memref.store %83, %arg6[%84, %85] : memref<2x8xf32, #tpu.memory_space<smem>>
    %cst_20 = arith.constant 0.000000e+00 : f32
    %87 = arith.select %81, %cst_20, %80 : f32
    %c6_i32 = arith.constant 6 : i32
    %88 = arith.index_cast %8 : i32 to index
    %89 = arith.index_cast %c6_i32 : i32 to index
    %90 = memref.load %arg5[%88, %89] : memref<2x8xf32, #tpu.memory_space<smem>>
    %91 = arith.addf %87, %90 : f32
    %92 = arith.cmpf oge, %91, %0 : f32
    %93 = arith.extui %92 : i1 to i32
    %94 = arith.sitofp %93 : i32 to f32
    %95 = arith.index_cast %8 : i32 to index
    %96 = arith.index_cast %c6_i32 : i32 to index
    %97 = memref.load %arg6[%95, %96] : memref<2x8xf32, #tpu.memory_space<smem>>
    memref.store %94, %arg6[%95, %96] : memref<2x8xf32, #tpu.memory_space<smem>>
    %cst_21 = arith.constant 0.000000e+00 : f32
    %98 = arith.select %92, %cst_21, %91 : f32
    %c7_i32 = arith.constant 7 : i32
    %99 = arith.index_cast %8 : i32 to index
    %100 = arith.index_cast %c7_i32 : i32 to index
    %101 = memref.load %arg5[%99, %100] : memref<2x8xf32, #tpu.memory_space<smem>>
    %102 = arith.addf %98, %101 : f32
    %103 = arith.cmpf oge, %102, %0 : f32
    %104 = arith.extui %103 : i1 to i32
    %105 = arith.sitofp %104 : i32 to f32
    %106 = arith.index_cast %8 : i32 to index
    %107 = arith.index_cast %c7_i32 : i32 to index
    %108 = memref.load %arg6[%106, %107] : memref<2x8xf32, #tpu.memory_space<smem>>
    memref.store %105, %arg6[%106, %107] : memref<2x8xf32, #tpu.memory_space<smem>>
    %cst_22 = arith.constant 0.000000e+00 : f32
    %109 = arith.select %103, %cst_22, %102 : f32
    %c8_i32 = arith.constant 8 : i32
    %c0_i32_23 = arith.constant 0 : i32
    %110 = tpu.memref_slice %arg6[%8, %c0_i32_23] : memref<2x8xf32, #tpu.memory_space<smem>> -> memref<1x8xf32, #tpu.memory_space<smem>>
    %111 = tpu.memref_squeeze %110 : memref<1x8xf32, #tpu.memory_space<smem>> -> memref<8xf32, #tpu.memory_space<smem>>
    %c0_i32_24 = arith.constant 0 : i32
    %112 = tpu.memref_slice %arg3[%c0_i32_5, %c0_i32_24] : memref<1x8xf32, #tpu.memory_space<any>> -> memref<1x8xf32, #tpu.memory_space<any>>
    %113 = tpu.memref_squeeze %112 : memref<1x8xf32, #tpu.memory_space<any>> -> memref<8xf32, #tpu.memory_space<any>>
    %114 = tpu.memref_slice %arg8[%8] : memref<2x!tpu.dma_semaphore, #tpu.memory_space<semaphore_mem>> -> memref<1x!tpu.dma_semaphore, #tpu.memory_space<semaphore_mem>>
    %115 = tpu.memref_squeeze %114 : memref<1x!tpu.dma_semaphore, #tpu.memory_space<semaphore_mem>> -> memref<!tpu.dma_semaphore, #tpu.memory_space<semaphore_mem>>
    tpu.enqueue_dma source(%111 : memref<8xf32, #tpu.memory_space<smem>>) target(%113 : memref<8xf32, #tpu.memory_space<any>>) target_semaphore(%115 : memref<!tpu.dma_semaphore, #tpu.memory_space<semaphore_mem>>)
    %c1_i32_25 = arith.constant 1 : i32
    %c0_26 = arith.constant 0 : index
    %116 = memref.load %arg4[%c0_26] : memref<1xf32, #tpu.memory_space<smem>>
    memref.store %109, %arg4[%c0_26] : memref<1xf32, #tpu.memory_space<smem>>
    %c0_i32_27 = arith.constant 0 : i32
    %c0_i32_28 = arith.constant 0 : i32
    %c0_i32_29 = arith.constant 0 : i32
    %c0_i32_30 = arith.constant 0 : i32
    %117 = tpu.memref_slice %arg6[%c0_i32_27, %c0_i32_30] : memref<2x8xf32, #tpu.memory_space<smem>> -> memref<1x8xf32, #tpu.memory_space<smem>>
    %118 = tpu.memref_squeeze %117 : memref<1x8xf32, #tpu.memory_space<smem>> -> memref<8xf32, #tpu.memory_space<smem>>
    %c0_i32_31 = arith.constant 0 : i32
    %119 = tpu.memref_slice %arg3[%c0_i32_28, %c0_i32_31] : memref<1x8xf32, #tpu.memory_space<any>> -> memref<1x8xf32, #tpu.memory_space<any>>
    %120 = tpu.memref_squeeze %119 : memref<1x8xf32, #tpu.memory_space<any>> -> memref<8xf32, #tpu.memory_space<any>>
    %121 = tpu.memref_slice %arg8[%c0_i32_29] : memref<2x!tpu.dma_semaphore, #tpu.memory_space<semaphore_mem>> -> memref<1x!tpu.dma_semaphore, #tpu.memory_space<semaphore_mem>>
    %122 = tpu.memref_squeeze %121 : memref<1x!tpu.dma_semaphore, #tpu.memory_space<semaphore_mem>> -> memref<!tpu.dma_semaphore, #tpu.memory_space<semaphore_mem>>
    tpu.wait_dma2 semaphore(%122 : memref<!tpu.dma_semaphore, #tpu.memory_space<semaphore_mem>>) src(%118 : memref<8xf32, #tpu.memory_space<smem>>) dst(%120 : memref<8xf32, #tpu.memory_space<any>>)
    return
  }
}

</mosaic_0001>

<bundles_post_ra>
// kernel: _neuron_seq.1
= control target key start
LH: loop header
LB: loop body
LE: loop exit
PB: predicated region body
PF: predicated region fallthrough
CT: control target
= control target key end

     0   :  { %12 = vsyncpa [#allocation9], 0  ;;  %s284_s0 = inlined_call_operand.vmem [shape: f32[1,8], index: 0, kind: input, shape index: {}]   ;;  %s285_s1 = inlined_call_operand.<no memory space> [shape: f32[1], index: 1, kind: input, shape index: {}]   ;;  %s286_s2 = inlined_call_operand.<no memory space> [shape: f32[1], index: 2, kind: input, shape index: {}, may-alias: {2,4}]   ;;  %s287_s3 = inlined_call_operand.hbm [shape: f32[1,8], index: 3, kind: output, shape index: {0}]   ;;  %s288_s4 = inlined_call_operand.hbm [shape: f32[1], index: 4, kind: output, shape index: {1}, may-alias: {2,4}]  }
   0x1   :  { %s25_s17 = sshll.u32 %s284_s0, 4  ;;  %s26_s17 = int_to_ptr.vmem [resolvable:$true] %s25_s17 }
   0x2   :  { %s164_s18 = scalar_lea.vmem %s26_s17, 16  ;;  %p169_p1 = scmp.lt.s32.totalorder %s26_s17, %s26_s17 }
   0x3   :  { %p165_p0 = scmp.ne.s32.totalorder %s26_s17, %s164_s18  ;;  %p170_p2 = scmp.lt.s32.totalorder %s164_s18, %s164_s18 }
   0x5   :  { %p171_p3 = por %p170_p2, %p169_p1 }
   0x7   :  { %p172_p4 = pnand %p171_p3, %p165_p0 }
   0x9   :  { %175 = shalt.err (!%p172_p4)  }
   0xa   :  { %s202_s19 = smov [#allocation2]  }
   0xb   :  { %28 = dma.vmem_to_smem %s26_s17, 16, %s202_s19, [#allocation4] }
   0xc   :  { %196 = dma.done.wait [#allocation4], 16 }
   0xd   :  { %197 = vsyncadd [#allocation4], 4294967280 }
   0xe   :  { %32 = sfence }
   0xf   :  { %s33_s20 = sld [smem:[#allocation2]]  ;;  %s150_s21 = sld [smem:[#allocation2 + $0x1]] }
  0x10   :  { %s151_s28 = sld [smem:[#allocation2 + $0x2]]  ;;  %s152_s8 = sld [smem:[#allocation2 + $0x3]] }
  0x11   :  { %s153_s13 = sld [smem:[#allocation2 + $0x4]]  ;;  %s154_s19 = sld [smem:[#allocation2 + $0x5]] }
  0x12   :  { %s155_s0 = sld [smem:[#allocation2 + $0x6]]  ;;  %s156_s30 = sld [smem:[#allocation2 + $0x7]] }
  0x13   :  { %s176_s16 = scalar_lea.hbm %s287_s3, 16 }
  0x14   :  { %p177_p13 = scmp.ne.s32.totalorder %s287_s3, %s176_s16  ;;  %p180_p0 = scmp.lt.u32.totalorder %s176_s16, %s287_s3 }
  0x15   :  { %s34_s24 = sadd.f32 %s33_s20, %s286_s2 }
  0x16   :  { %p182_p1 = pnand %p180_p0, %p177_p13 }
  0x17   :  { %p35_p5 = scmp.ge.f32.partialorder %s34_s24, %s285_s1 }
  0x19   :  { %s36_s26 = scalar_select %p35_p5, 1, 0 }
  0x1a   :  { %s290_s24 = smov (%p35_p5, %s34_s24), 0.0 }
  0x1b   :  { %s37_s27 = scvt.s32.f32 %s36_s26  ;;  %s42_s29 = sadd.f32 %s150_s21, %s290_s24 }
  0x1d   :  { %39 = sst [smem:[#allocation3]] %s37_s27  ;;  %p43_p6 = scmp.ge.f32.partialorder %s42_s29, %s285_s1 }
  0x1f   :  { %s44_s6 = scalar_select %p43_p6, 1, 0 }
  0x20   :  { %s292_s29 = smov (%p43_p6, %s42_s29), 0.0 }
  0x21   :  { %s45_s7 = scvt.s32.f32 %s44_s6  ;;  %s50_s9 = sadd.f32 %s151_s28, %s292_s29 }
  0x23   :  { %47 = sst [smem:[#allocation3 + $0x1]] %s45_s7  ;;  %p51_p7 = scmp.ge.f32.partialorder %s50_s9, %s285_s1 }
  0x25   :  { %s52_s11 = scalar_select %p51_p7, 1, 0 }
  0x26   :  { %s294_s9 = smov (%p51_p7, %s50_s9), 0.0 }
  0x27   :  { %s53_s12 = scvt.s32.f32 %s52_s11  ;;  %s58_s14 = sadd.f32 %s152_s8, %s294_s9 }
  0x29   :  { %55 = sst [smem:[#allocation3 + $0x2]] %s53_s12  ;;  %p59_p8 = scmp.ge.f32.partialorder %s58_s14, %s285_s1 }
  0x2b   :  { %s60_s17 = scalar_select %p59_p8, 1, 0 }
  0x2c   :  { %s296_s14 = smov (%p59_p8, %s58_s14), 0.0 }
  0x2d   :  { %s61_s18 = scvt.s32.f32 %s60_s17  ;;  %s66_s20 = sadd.f32 %s153_s13, %s296_s14 }
  0x2f   :  { %63 = sst [smem:[#allocation3 + $0x3]] %s61_s18  ;;  %p67_p9 = scmp.ge.f32.partialorder %s66_s20, %s285_s1 }
  0x31   :  { %s68_s23 = scalar_select %p67_p9, 1, 0 }
  0x32   :  { %s298_s20 = smov (%p67_p9, %s66_s20), 0.0 }
  0x33   :  { %s69_s24 = scvt.s32.f32 %s68_s23  ;;  %s74_s25 = sadd.f32 %s154_s19, %s298_s20 }
  0x35   :  { %71 = sst [smem:[#allocation3 + $0x4]] %s69_s24  ;;  %p75_p10 = scmp.ge.f32.partialorder %s74_s25, %s285_s1 }
  0x37   :  { %s76_s28 = scalar_select %p75_p10, 1, 0 }
  0x38   :  { %s300_s25 = smov (%p75_p10, %s74_s25), 0.0 }
  0x39   :  { %s77_s29 = scvt.s32.f32 %s76_s28  ;;  %s82_s5 = sadd.f32 %s155_s0, %s300_s25 }
  0x3b   :  { %79 = sst [smem:[#allocation3 + $0x5]] %s77_s29  ;;  %p83_p11 = scmp.ge.f32.partialorder %s82_s5, %s285_s1 }
  0x3d   :  { %s84_s8 = scalar_select %p83_p11, 1, 0 }
  0x3e   :  { %s302_s5 = smov (%p83_p11, %s82_s5), 0.0 }
  0x3f   :  { %s85_s9 = scvt.s32.f32 %s84_s8  ;;  %s90_s2 = sadd.f32 %s156_s30, %s302_s5 }
  0x41   :  { %87 = sst [smem:[#allocation3 + $0x6]] %s85_s9  ;;  %p91_p12 = scmp.ge.f32.partialorder %s90_s2, %s285_s1 }
  0x43   :  { %s92_s12 = scalar_select %p91_p12, 1, 0 }
  0x44   :  { %s304_s2 = smov (%p91_p12, %s90_s2), 0.0 }
  0x45   :  { %s93_s13 = scvt.s32.f32 %s92_s12  ;;  %107 = sst [smem:[#allocation8]] %s304_s2 }
  0x47   :  { %95 = sst [smem:[#allocation3 + $0x7]] %s93_s13 }
  0x48   :  { %185 = shalt.err (!%p182_p1)  }
  0x49   :  { %s203_s1 = smov [#allocation3]  }
  0x4a   :  { %105 = dma.smem_to_hbm %s203_s1, 16, %s287_s3, [#allocation5] }
  0x4b   :  { %198 = dma.done.wait [#allocation5], 16 }
  0x4c   :  { %199 = vsyncadd [#allocation5], 4294967280 }
  0x4d   :  { %110 = sfence }
  0x4e   :  { %s186_s0 = scalar_lea.hbm %s288_s4, 16 }
  0x4f   :  { %p187_p2 = scmp.ne.s32.totalorder %s288_s4, %s186_s0  ;;  %p190_p3 = scmp.lt.u32.totalorder %s186_s0, %s288_s4 }
  0x51   :  { %p192_p4 = pnand %p190_p3, %p187_p2 }
  0x53   :  { %195 = shalt.err (!%p192_p4)
}
  0x54   :  { %s204_s29 = smov [#allocation8]  }
  0x55   :  { %118 = dma.smem_to_hbm %s204_s29, 16, %s288_s4, [#allocation9]  }
  0x56   :  { %200 = dma.done.wait [#allocation9], 16  }
  0x57   :  { %201 = vsyncadd [#allocation9], 4294967280 }
  0x58   :  { %122 = sfence }
  0x59   :  { %123 = vsyncpa [#allocation9], 1 }
  0x5a   :  { %124 = vsyncmov [#allocation4] }
  0x5d   :  { %s125_s5 = vpop.sfrf %124 }
  0x5e   :  { %p157_p5 = scmp.ne.s32.totalorder %s125_s5, 0 }
  0x60   :  { %129 = shalt.err (%p157_p5)  }
  0x61   :  { %131 = vsyncmov [#allocation4 + $0x1] }
  0x64   :  { %s132_s6 = vpop.sfrf %131 }
  0x65   :  { %p158_p6 = scmp.ne.s32.totalorder %s132_s6, 0 }
  0x67   :  { %136 = shalt.err (%p158_p6)  }
  0x68   :  { %137 = vsyncmov [#allocation5] }
  0x6b   :  { %s138_s7 = vpop.sfrf %137 }
  0x6c   :  { %p159_p7 = scmp.ne.s32.totalorder %s138_s7, 0 }
  0x6e   :  { %142 = shalt.err (%p159_p7)  }
  0x6f   :  { %144 = vsyncmov [#allocation5 + $0x1] }
  0x72   :  { %s145_s8 = vpop.sfrf %144 }
  0x73   :  { %p160_p8 = scmp.ne.s32.totalorder %s145_s8, 0 }
  0x75   :  { %149 = shalt.err (%p160_p8)  }

</bundles_post_ra>
